<compile_context>
chip_gen: v5e
topology: v5e:2x2
jax: 0.10.0
libtpu: 0.0.40
codegen_flags: <defaults>
</compile_context>

<pallas_src>
import jax
import jax.numpy as jnp
from jax.experimental import pallas as pl
from jax.experimental.pallas import tpu as pltpu


def dense_layer_forward(x_nchw, gamma, beta, wt, eps=1e-5, nb=None):
    """DenseLayer.forward.

    x_nchw: (N, Cin, H, W) float32
    gamma, beta: (Cin,) BatchNorm2d weight / bias
    wt: (Cin, Cout, 3, 3) ConvTranspose2d weight (PyTorch layout)
    returns (N, Cin + Cout, H, W) float32  ==  torch.cat([x, layers(x)], 1)
    """
    N, Cin, H, W = x_nchw.shape
    Cout = wt.shape[1]
    Ctot = Cin + Cout
    HW = H * W
    # NOTE: best performance when HW is a multiple of 128 and Cin/Cout are
    # multiples of 8 (lane-dense loads/stores); correct either way.

    x = x_nchw.astype(jnp.float32)

    # BatchNorm2d (training-mode batch statistics, biased variance) folded into
    # a per-channel scale/shift applied inside the kernel.  Single-pass stats:
    # E[x] and E[x^2] computed together so x is read from HBM only once here.
    # TODO(synk): running_mean/running_var buffers are not tracked/updated.
    n_red = N * H * W
    s1 = jnp.sum(x, axis=(0, 2, 3))
    s2 = jnp.sum(x * x, axis=(0, 2, 3))
    mean = s1 / n_red
    var = jnp.maximum(s2 / n_red - mean * mean, 0.0)   # guard cancellation
    inv = gamma.astype(jnp.float32) / jnp.sqrt(var + eps)
    scale = inv.reshape(Cin, 1)
    shift = (beta.astype(jnp.float32) - mean * inv).reshape(Cin, 1)

    # ConvTranspose2d(k=3, s=1, p=1) == SAME conv with spatially flipped kernel
    # and swapped in/out channels.  Pack as one (Cout, 9*Cin) im2col weight in
    # bf16 for the MXU; rows of the im2col RHS are ordered (kh, kw, ci).
    w_taps = jnp.transpose(jnp.flip(wt, axis=(2, 3)), (2, 3, 0, 1))   # (3,3,Cin,Cout)
    w_mat = w_taps.reshape(9 * Cin, Cout).T.astype(jnp.bfloat16)      # (Cout, 9*Cin)

    # Border-validity 0/1 masks per tap over the flattened spatial index.
    # They also kill the wrap-around introduced by the cyclic pltpu.roll.
    yy, xx = jnp.meshgrid(jnp.arange(H), jnp.arange(W), indexing="ij")
    mask_list = []
    for kh in range(3):
        for kw in range(3):
            dy, dx = kh - 1, kw - 1
            valid = ((yy + dy >= 0) & (yy + dy < H) &
                     (xx + dx >= 0) & (xx + dx < W))
            mask_list.append(valid.reshape(1, HW))
    masks = jnp.stack(mask_list, axis=0).astype(jnp.float32)          # (9, 1, HW)

    x_flat = x.reshape(N, Cin, HW)   # free reshape (contiguous NCHW)

    # Batch block size from a VMEM budget (v7x has only 64 MiB VMEM/TC).
    def _vmem_bytes(nb_):
        in_b = 2 * nb_ * Cin * HW * 4            # double-buffered input block
        out_b = 2 * nb_ * Ctot * HW * 4          # double-buffered output block
        scr_b = 9 * Cin * nb_ * HW * 2           # bf16 im2col scratch
        const_b = Cout * 9 * Cin * 2 + 9 * HW * 4 + 2 * Cin * 4
        return in_b + out_b + scr_b + const_b

    if nb is None:
        nb = 1
        budget = 24 * 1024 * 1024
        for min_steps in (4, 2):                 # prefer >= 4 grid steps (2 TCs)
            for cand in (8, 4, 2):
                if (N % cand == 0 and N // cand >= min_steps
                        and _vmem_bytes(cand) <= budget):
                    nb = cand
                    break
            if nb > 1:
                break
    assert N % nb == 0, "batch block must divide N"

    vmem_limit = int(min(64 * 1024 * 1024,
                         max(32 * 1024 * 1024, 2 * _vmem_bytes(nb))))

    def kernel(x_ref, scale_ref, shift_ref, w_ref, mask_ref, o_ref, m_ref):
        # x_ref:        (nb, Cin, HW)       f32
        # scale/shift:  (Cin, 1)            f32   folded BatchNorm
        # w_ref:        (Cout, 9*Cin)       bf16  im2col conv weight
        # mask_ref:     (9, 1, HW)          f32   0/1 border masks per tap
        # o_ref:        (nb, Cin+Cout, HW)  f32   fused cat([x, new_features])
        # m_ref:        (9*Cin, nb*HW)      bf16  im2col RHS scratch
        sc = scale_ref[...]
        sh = shift_ref[...]
        # Hoist mask broadcasts out of the per-image loop (center tap t=4 is
        # all ones and skips its multiply entirely).
        mbs = {}
        for t in range(9):
            if t != 4:
                mbs[t] = jnp.broadcast_to(mask_ref[t], (Cin, HW))

        for b in range(nb):
            xb = x_ref[b]                                      # (Cin, HW)
            o_ref[b, 0:Cin, :] = xb                            # pass-through half of cat
            hb = jnp.maximum(xb * sc + sh, 0.0)                # BN + ReLU (f32 VPU)
            # 9 shifted taps via XLU rotates; wrap-around is killed by masks.
            for t in range(9):
                kh, kw = t // 3, t % 3
                d = (kh - 1) * W + (kw - 1)
                if d == 0:
                    tap = hb
                else:
                    tap = pltpu.roll(hb, shift=(-d) % HW, axis=1) * mbs[t]
                m_ref[t * Cin:(t + 1) * Cin, b * HW:(b + 1) * HW] = (
                    tap.astype(jnp.bfloat16))

        # One batched MXU matmul per grid step: (Cout, 9*Cin) x (9*Cin, nb*HW).
        nf = jnp.dot(w_ref[...], m_ref[...],
                     preferred_element_type=jnp.float32)       # (Cout, nb*HW)
        for b in range(nb):
            o_ref[b, Cin:Ctot, :] = (
                nf[:, b * HW:(b + 1) * HW].astype(o_ref.dtype))

    out_flat = pl.pallas_call(
        kernel,
        out_shape=jax.ShapeDtypeStruct((N, Ctot, HW), jnp.float32),
        grid_spec=pltpu.PrefetchScalarGridSpec(
            num_scalar_prefetch=0,
            grid=(N // nb,),
            in_specs=[
                pl.BlockSpec((nb, Cin, HW), lambda n: (n, 0, 0)),
                pl.BlockSpec((Cin, 1), lambda n: (0, 0)),
                pl.BlockSpec((Cin, 1), lambda n: (0, 0)),
                pl.BlockSpec((Cout, 9 * Cin), lambda n: (0, 0)),
                pl.BlockSpec((9, 1, HW), lambda n: (0, 0, 0)),
            ],
            out_specs=pl.BlockSpec((nb, Ctot, HW), lambda n: (n, 0, 0)),
            scratch_shapes=[pltpu.VMEM((9 * Cin, nb * HW), jnp.bfloat16)],
        ),
        compiler_params=pltpu.CompilerParams(
            dimension_semantics=("parallel",),
            vmem_limit_bytes=vmem_limit,
        ),
    )(x_flat, scale, shift, w_mat, masks)

    return out_flat.reshape(N, Ctot, H, W)   # free reshape back to NCHW


if __name__ == "__main__":
    key = jax.random.PRNGKey(0)
    k1, k2, k3, k4 = jax.random.split(key, 4)

    N, Cin, H, W = 2, 4, 16, 16
    growth = 4

    x = jax.random.normal(k1, (N, Cin, H, W), jnp.float32)
    gamma = 1.0 + 0.1 * jax.random.normal(k2, (Cin,), jnp.float32)   # BN weight
    beta = 0.1 * jax.random.normal(k3, (Cin,), jnp.float32)          # BN bias
    # PyTorch ConvTranspose2d weight shape: (in_channels, out_channels, kH, kW)
    wt = 0.1 * jax.random.normal(k4, (Cin, growth, 3, 3), jnp.float32)

    out = jax.block_until_ready(dense_layer_forward(x, gamma, beta, wt))
    assert out.shape == (N, Cin + growth, H, W)

    # Pure-JAX NCHW reference (XLA conv, f32) to validate the kernel.
    eps = 1e-5
    mean = jnp.mean(x, axis=(0, 2, 3))
    var = jnp.mean(jnp.square(x - mean[None, :, None, None]), axis=(0, 2, 3))
    h = jnp.maximum(
        (x - mean[None, :, None, None]) / jnp.sqrt(var + eps)[None, :, None, None]
        * gamma[None, :, None, None] + beta[None, :, None, None], 0.0)
    w_oihw = jnp.transpose(jnp.flip(wt, axis=(2, 3)), (1, 0, 2, 3))   # (Cout,Cin,3,3)
    ref_nf = jax.lax.conv_general_dilated(
        h, w_oihw, window_strides=(1, 1), padding="SAME",
        dimension_numbers=("NCHW", "OIHW", "NCHW"))

    # Pass-through channels must match exactly; conv channels to bf16 tolerance.
    assert jnp.allclose(out[:, :Cin], x, atol=1e-6), "passthrough mismatch"
    err = float(jnp.max(jnp.abs(out[:, Cin:] - ref_nf)))
    assert err < 3e-2, f"kernel mismatch vs reference (max abs err {err})"

    print("KERNEL_OK")
</pallas_src>

<mosaic_0001>
module attributes {stable_mosaic.version = 11 : i64} {
  func.func @kernel(%arg0: i32, %arg1: memref<1x4x256xf32, #tpu.memory_space<vmem>>, %arg2: memref<4x1xf32, #tpu.memory_space<vmem>>, %arg3: memref<4x1xf32, #tpu.memory_space<vmem>>, %arg4: memref<4x36xbf16, #tpu.memory_space<vmem>>, %arg5: memref<9x1x256xf32, #tpu.memory_space<vmem>>, %arg6: memref<1x8x256xf32, #tpu.memory_space<vmem>>, %arg7: memref<36x256xbf16, #tpu.memory_space<vmem>>) attributes {dimension_semantics = [#tpu.dimension_semantics<parallel>], iteration_bounds = array<i64: 2>, scalar_prefetch = 0 : i64, scratch_operands = 1 : i64, tpu.core_type = #tpu.core_type<tc>, window_params = [{transform_indices = @transform_0, window_bounds = array<i64: 1, 4, 256>}, {pipeline_mode = #tpu.pipeline_mode<synchronous>, transform_indices = @transform_1, window_bounds = array<i64: 4, 1>}, {pipeline_mode = #tpu.pipeline_mode<synchronous>, transform_indices = @transform_2, window_bounds = array<i64: 4, 1>}, {pipeline_mode = #tpu.pipeline_mode<synchronous>, transform_indices = @transform_3, window_bounds = array<i64: 4, 36>}, {pipeline_mode = #tpu.pipeline_mode<synchronous>, transform_indices = @transform_4, window_bounds = array<i64: 9, 1, 256>}, {transform_indices = @transform_5, window_bounds = array<i64: 1, 8, 256>}]} {
    %c0 = arith.constant 0 : index
    %c0_0 = arith.constant 0 : index
    %0 = vector.load %arg2[%c0, %c0_0] : memref<4x1xf32, #tpu.memory_space<vmem>>, vector<4x1xf32>
    %c0_1 = arith.constant 0 : index
    %c0_2 = arith.constant 0 : index
    %1 = vector.load %arg3[%c0_1, %c0_2] : memref<4x1xf32, #tpu.memory_space<vmem>>, vector<4x1xf32>
    %c0_3 = arith.constant 0 : index
    %c0_4 = arith.constant 0 : index
    %c0_5 = arith.constant 0 : index
    %2 = vector.load %arg5[%c0_3, %c0_4, %c0_5] : memref<9x1x256xf32, #tpu.memory_space<vmem>>, vector<1x1x256xf32>
    %3 = vector.shape_cast %2 : vector<1x1x256xf32> to vector<1x256xf32>
    %4 = vector.shape_cast %3 : vector<1x256xf32> to vector<1x256xf32>
    %5 = vector.broadcast %4 : vector<1x256xf32> to vector<4x256xf32>
    %c1 = arith.constant 1 : index
    %c0_6 = arith.constant 0 : index
    %c0_7 = arith.constant 0 : index
    %6 = vector.load %arg5[%c1, %c0_6, %c0_7] : memref<9x1x256xf32, #tpu.memory_space<vmem>>, vector<1x1x256xf32>
    %7 = vector.shape_cast %6 : vector<1x1x256xf32> to vector<1x256xf32>
    %8 = vector.shape_cast %7 : vector<1x256xf32> to vector<1x256xf32>
    %9 = vector.broadcast %8 : vector<1x256xf32> to vector<4x256xf32>
    %c2 = arith.constant 2 : index
    %c0_8 = arith.constant 0 : index
    %c0_9 = arith.constant 0 : index
    %10 = vector.load %arg5[%c2, %c0_8, %c0_9] : memref<9x1x256xf32, #tpu.memory_space<vmem>>, vector<1x1x256xf32>
    %11 = vector.shape_cast %10 : vector<1x1x256xf32> to vector<1x256xf32>
    %12 = vector.shape_cast %11 : vector<1x256xf32> to vector<1x256xf32>
    %13 = vector.broadcast %12 : vector<1x256xf32> to vector<4x256xf32>
    %c3 = arith.constant 3 : index
    %c0_10 = arith.constant 0 : index
    %c0_11 = arith.constant 0 : index
    %14 = vector.load %arg5[%c3, %c0_10, %c0_11] : memref<9x1x256xf32, #tpu.memory_space<vmem>>, vector<1x1x256xf32>
    %15 = vector.shape_cast %14 : vector<1x1x256xf32> to vector<1x256xf32>
    %16 = vector.shape_cast %15 : vector<1x256xf32> to vector<1x256xf32>
    %17 = vector.broadcast %16 : vector<1x256xf32> to vector<4x256xf32>
    %c5 = arith.constant 5 : index
    %c0_12 = arith.constant 0 : index
    %c0_13 = arith.constant 0 : index
    %18 = vector.load %arg5[%c5, %c0_12, %c0_13] : memref<9x1x256xf32, #tpu.memory_space<vmem>>, vector<1x1x256xf32>
    %19 = vector.shape_cast %18 : vector<1x1x256xf32> to vector<1x256xf32>
    %20 = vector.shape_cast %19 : vector<1x256xf32> to vector<1x256xf32>
    %21 = vector.broadcast %20 : vector<1x256xf32> to vector<4x256xf32>
    %c6 = arith.constant 6 : index
    %c0_14 = arith.constant 0 : index
    %c0_15 = arith.constant 0 : index
    %22 = vector.load %arg5[%c6, %c0_14, %c0_15] : memref<9x1x256xf32, #tpu.memory_space<vmem>>, vector<1x1x256xf32>
    %23 = vector.shape_cast %22 : vector<1x1x256xf32> to vector<1x256xf32>
    %24 = vector.shape_cast %23 : vector<1x256xf32> to vector<1x256xf32>
    %25 = vector.broadcast %24 : vector<1x256xf32> to vector<4x256xf32>
    %c7 = arith.constant 7 : index
    %c0_16 = arith.constant 0 : index
    %c0_17 = arith.constant 0 : index
    %26 = vector.load %arg5[%c7, %c0_16, %c0_17] : memref<9x1x256xf32, #tpu.memory_space<vmem>>, vector<1x1x256xf32>
    %27 = vector.shape_cast %26 : vector<1x1x256xf32> to vector<1x256xf32>
    %28 = vector.shape_cast %27 : vector<1x256xf32> to vector<1x256xf32>
    %29 = vector.broadcast %28 : vector<1x256xf32> to vector<4x256xf32>
    %c8 = arith.constant 8 : index
    %c0_18 = arith.constant 0 : index
    %c0_19 = arith.constant 0 : index
    %30 = vector.load %arg5[%c8, %c0_18, %c0_19] : memref<9x1x256xf32, #tpu.memory_space<vmem>>, vector<1x1x256xf32>
    %31 = vector.shape_cast %30 : vector<1x1x256xf32> to vector<1x256xf32>
    %32 = vector.shape_cast %31 : vector<1x256xf32> to vector<1x256xf32>
    %33 = vector.broadcast %32 : vector<1x256xf32> to vector<4x256xf32>
    %c0_20 = arith.constant 0 : index
    %c0_21 = arith.constant 0 : index
    %c0_22 = arith.constant 0 : index
    %34 = vector.load %arg1[%c0_20, %c0_21, %c0_22] : memref<1x4x256xf32, #tpu.memory_space<vmem>>, vector<1x4x256xf32>
    %35 = vector.shape_cast %34 : vector<1x4x256xf32> to vector<4x256xf32>
    %c0_23 = arith.constant 0 : index
    %c0_24 = arith.constant 0 : index
    %c0_25 = arith.constant 0 : index
    %36 = vector.load %arg6[%c0_23, %c0_24, %c0_25] : memref<1x8x256xf32, #tpu.memory_space<vmem>>, vector<1x4x256xf32>
    %37 = vector.shape_cast %36 : vector<1x4x256xf32> to vector<4x256xf32>
    %38 = vector.shape_cast %35 : vector<4x256xf32> to vector<1x4x256xf32>
    tpu.vector_store %arg6[%c0_23, %c0_24, %c0_25], %38 {strides = array<i32>} : memref<1x8x256xf32, #tpu.memory_space<vmem>>, vector<1x4x256xf32>,
    %39 = vector.broadcast %0 : vector<4x1xf32> to vector<4x256xf32>
    %40 = arith.mulf %35, %39 : vector<4x256xf32>
    %41 = vector.broadcast %1 : vector<4x1xf32> to vector<4x256xf32>
    %42 = arith.addf %40, %41 : vector<4x256xf32>
    %cst = arith.constant 0.000000e+00 : f32
    %43 = vector.broadcast %cst : f32 to vector<4x256xf32>
    %44 = arith.maximumf %42, %43 : vector<4x256xf32>
    %c17_i32 = arith.constant 17 : i32
    %45 = tpu.dynamic_rotate %44 by %c17_i32 dim 1 : vector<4x256xf32>, i32 -> vector<4x256xf32>
    %46 = arith.mulf %45, %5 : vector<4x256xf32>
    %47 = arith.truncf %46 : vector<4x256xf32> to vector<4x256xbf16>
    %c0_26 = arith.constant 0 : index
    %c0_27 = arith.constant 0 : index
    %48 = vector.load %arg7[%c0_26, %c0_27] : memref<36x256xbf16, #tpu.memory_space<vmem>>, vector<4x256xbf16>
    tpu.vector_store %arg7[%c0_26, %c0_27], %47 {strides = array<i32>} : memref<36x256xbf16, #tpu.memory_space<vmem>>, vector<4x256xbf16>,
    %c16_i32 = arith.constant 16 : i32
    %49 = tpu.dynamic_rotate %44 by %c16_i32 dim 1 : vector<4x256xf32>, i32 -> vector<4x256xf32>
    %50 = arith.mulf %49, %9 : vector<4x256xf32>
    %51 = arith.truncf %50 : vector<4x256xf32> to vector<4x256xbf16>
    %c4 = arith.constant 4 : index
    %c0_28 = arith.constant 0 : index
    %52 = vector.load %arg7[%c4, %c0_28] : memref<36x256xbf16, #tpu.memory_space<vmem>>, vector<4x256xbf16>
    tpu.vector_store %arg7[%c4, %c0_28], %51 {strides = array<i32>} : memref<36x256xbf16, #tpu.memory_space<vmem>>, vector<4x256xbf16>,
    %c15_i32 = arith.constant 15 : i32
    %53 = tpu.dynamic_rotate %44 by %c15_i32 dim 1 : vector<4x256xf32>, i32 -> vector<4x256xf32>
    %54 = arith.mulf %53, %13 : vector<4x256xf32>
    %55 = arith.truncf %54 : vector<4x256xf32> to vector<4x256xbf16>
    %c8_29 = arith.constant 8 : index
    %c0_30 = arith.constant 0 : index
    %56 = vector.load %arg7[%c8_29, %c0_30] : memref<36x256xbf16, #tpu.memory_space<vmem>>, vector<4x256xbf16>
    tpu.vector_store %arg7[%c8_29, %c0_30], %55 {strides = array<i32>} : memref<36x256xbf16, #tpu.memory_space<vmem>>, vector<4x256xbf16>,
    %c1_i32 = arith.constant 1 : i32
    %57 = tpu.dynamic_rotate %44 by %c1_i32 dim 1 : vector<4x256xf32>, i32 -> vector<4x256xf32>
    %58 = arith.mulf %57, %17 : vector<4x256xf32>
    %59 = arith.truncf %58 : vector<4x256xf32> to vector<4x256xbf16>
    %c12 = arith.constant 12 : index
    %c0_31 = arith.constant 0 : index
    %60 = vector.load %arg7[%c12, %c0_31] : memref<36x256xbf16, #tpu.memory_space<vmem>>, vector<4x256xbf16>
    tpu.vector_store %arg7[%c12, %c0_31], %59 {strides = array<i32>} : memref<36x256xbf16, #tpu.memory_space<vmem>>, vector<4x256xbf16>,
    %61 = arith.truncf %44 : vector<4x256xf32> to vector<4x256xbf16>
    %c16 = arith.constant 16 : index
    %c0_32 = arith.constant 0 : index
    %62 = vector.load %arg7[%c16, %c0_32] : memref<36x256xbf16, #tpu.memory_space<vmem>>, vector<4x256xbf16>
    tpu.vector_store %arg7[%c16, %c0_32], %61 {strides = array<i32>} : memref<36x256xbf16, #tpu.memory_space<vmem>>, vector<4x256xbf16>,
    %c255_i32 = arith.constant 255 : i32
    %63 = tpu.dynamic_rotate %44 by %c255_i32 dim 1 : vector<4x256xf32>, i32 -> vector<4x256xf32>
    %64 = arith.mulf %63, %21 : vector<4x256xf32>
    %65 = arith.truncf %64 : vector<4x256xf32> to vector<4x256xbf16>
    %c20 = arith.constant 20 : index
    %c0_33 = arith.constant 0 : index
    %66 = vector.load %arg7[%c20, %c0_33] : memref<36x256xbf16, #tpu.memory_space<vmem>>, vector<4x256xbf16>
    tpu.vector_store %arg7[%c20, %c0_33], %65 {strides = array<i32>} : memref<36x256xbf16, #tpu.memory_space<vmem>>, vector<4x256xbf16>,
    %c241_i32 = arith.constant 241 : i32
    %67 = tpu.dynamic_rotate %44 by %c241_i32 dim 1 : vector<4x256xf32>, i32 -> vector<4x256xf32>
    %68 = arith.mulf %67, %25 : vector<4x256xf32>
    %69 = arith.truncf %68 : vector<4x256xf32> to vector<4x256xbf16>
    %c24 = arith.constant 24 : index
    %c0_34 = arith.constant 0 : index
    %70 = vector.load %arg7[%c24, %c0_34] : memref<36x256xbf16, #tpu.memory_space<vmem>>, vector<4x256xbf16>
    tpu.vector_store %arg7[%c24, %c0_34], %69 {strides = array<i32>} : memref<36x256xbf16, #tpu.memory_space<vmem>>, vector<4x256xbf16>,
    %c240_i32 = arith.constant 240 : i32
    %71 = tpu.dynamic_rotate %44 by %c240_i32 dim 1 : vector<4x256xf32>, i32 -> vector<4x256xf32>
    %72 = arith.mulf %71, %29 : vector<4x256xf32>
    %73 = arith.truncf %72 : vector<4x256xf32> to vector<4x256xbf16>
    %c28 = arith.constant 28 : index
    %c0_35 = arith.constant 0 : index
    %74 = vector.load %arg7[%c28, %c0_35] : memref<36x256xbf16, #tpu.memory_space<vmem>>, vector<4x256xbf16>
    tpu.vector_store %arg7[%c28, %c0_35], %73 {strides = array<i32>} : memref<36x256xbf16, #tpu.memory_space<vmem>>, vector<4x256xbf16>,
    %c239_i32 = arith.constant 239 : i32
    %75 = tpu.dynamic_rotate %44 by %c239_i32 dim 1 : vector<4x256xf32>, i32 -> vector<4x256xf32>
    %76 = arith.mulf %75, %33 : vector<4x256xf32>
    %77 = arith.truncf %76 : vector<4x256xf32> to vector<4x256xbf16>
    %c32 = arith.constant 32 : index
    %c0_36 = arith.constant 0 : index
    %78 = vector.load %arg7[%c32, %c0_36] : memref<36x256xbf16, #tpu.memory_space<vmem>>, vector<4x256xbf16>
    tpu.vector_store %arg7[%c32, %c0_36], %77 {strides = array<i32>} : memref<36x256xbf16, #tpu.memory_space<vmem>>, vector<4x256xbf16>,
    %c0_37 = arith.constant 0 : index
    %c0_38 = arith.constant 0 : index
    %79 = vector.load %arg4[%c0_37, %c0_38] : memref<4x36xbf16, #tpu.memory_space<vmem>>, vector<4x36xbf16>
    %c0_39 = arith.constant 0 : index
    %c0_40 = arith.constant 0 : index
    %80 = vector.load %arg7[%c0_39, %c0_40] : memref<36x256xbf16, #tpu.memory_space<vmem>>, vector<36x256xbf16>
    %cst_41 = arith.constant dense<0.000000e+00> : vector<4x256xf32>
    %81 = tpu.matmul %79, %80, %cst_41 {dimension_numbers = #tpu.dot_dimension_numbers<[1], [0], [0], [1], [0, 0, 1, 1], [], []>} : vector<4x36xbf16>, vector<36x256xbf16>, vector<4x256xf32> -> vector<4x256xf32>
    %c0_42 = arith.constant 0 : index
    %c4_43 = arith.constant 4 : index
    %c0_44 = arith.constant 0 : index
    %82 = vector.load %arg6[%c0_42, %c4_43, %c0_44] : memref<1x8x256xf32, #tpu.memory_space<vmem>>, vector<1x4x256xf32>
    %83 = vector.shape_cast %82 : vector<1x4x256xf32> to vector<4x256xf32>
    %84 = vector.shape_cast %81 : vector<4x256xf32> to vector<1x4x256xf32>
    tpu.vector_store %arg6[%c0_42, %c4_43, %c0_44], %84 {strides = array<i32>} : memref<1x8x256xf32, #tpu.memory_space<vmem>>, vector<1x4x256xf32>,
    return
  }
  func.func @transform_0(%arg0: i32) -> (i32, i32, i32) {
    %c0_i32 = arith.constant 0 : i32
    %c0_i32_0 = arith.constant 0 : i32
    %c0_i32_1 = arith.constant 0 : i32
    return %arg0, %c0_i32, %c0_i32_0 : i32, i32, i32
  }
  func.func @transform_1(%arg0: i32) -> (i32, i32) {
    %c0_i32 = arith.constant 0 : i32
    %c0_i32_0 = arith.constant 0 : i32
    %c0_i32_1 = arith.constant 0 : i32
    return %c0_i32, %c0_i32_0 : i32, i32
  }
  func.func @transform_2(%arg0: i32) -> (i32, i32) {
    %c0_i32 = arith.constant 0 : i32
    %c0_i32_0 = arith.constant 0 : i32
    %c0_i32_1 = arith.constant 0 : i32
    return %c0_i32, %c0_i32_0 : i32, i32
  }
  func.func @transform_3(%arg0: i32) -> (i32, i32) {
    %c0_i32 = arith.constant 0 : i32
    %c0_i32_0 = arith.constant 0 : i32
    %c0_i32_1 = arith.constant 0 : i32
    return %c0_i32, %c0_i32_0 : i32, i32
  }
  func.func @transform_4(%arg0: i32) -> (i32, i32, i32) {
    %c0_i32 = arith.constant 0 : i32
    %c0_i32_0 = arith.constant 0 : i32
    %c0_i32_1 = arith.constant 0 : i32
    %c0_i32_2 = arith.constant 0 : i32
    return %c0_i32, %c0_i32_0, %c0_i32_1 : i32, i32, i32
  }
  func.func @transform_5(%arg0: i32) -> (i32, i32, i32) {
    %c0_i32 = arith.constant 0 : i32
    %c0_i32_0 = arith.constant 0 : i32
    %c0_i32_1 = arith.constant 0 : i32
    return %arg0, %c0_i32, %c0_i32_0 : i32, i32, i32
  }
}

</mosaic_0001>

<bundles_post_ra>
// kernel: tpu_custom_call.1
= control target key start
LH: loop header
LB: loop body
LE: loop exit
PB: predicated region body
PF: predicated region fallthrough
CT: control target
= control target key end

     0   :  { %10 = vsyncpa [#allocation4], 0  ;;  %s1121_s0 = inlined_call_operand.hbm [shape: f32[2,4,256], index: 0, kind: input, shape index: {}]   ;;  %s1122_s1 = inlined_call_operand.vmem [shape: f32[4,1], index: 1, kind: input, shape index: {}]   ;;  %s1123_s2 = inlined_call_operand.vmem [shape: f32[4,1], index: 2, kind: input, shape index: {}]   ;;  %s1124_s3 = inlined_call_operand.vmem [shape: bf16[4,36], index: 3, kind: input, shape index: {}]   ;;  %s1125_s4 = inlined_call_operand.hbm [shape: f32[9,1,256], index: 4, kind: input, shape index: {}]   ;;  %s1126_s5 = inlined_call_operand.hbm [shape: f32[2,8,256], index: 5, kind: output, shape index: {}]  }
   0x1   :  { %12 = vsyncpa [#allocation4 + $0x1], 0 }
   0x2   :  { %13 = vsyncpa [#allocation7], 0 }
   0x3   :  { %14 = vsyncpa [#allocation5], 0 }
   0x4   :  { %16 = vsyncpa [#allocation5 + $0x1], 0  ;;  %s956_s18 = smov 0   ;;  %s958_s19 = smov 0  }
   0x5   :  { %s960_s20 = smov 0   ;;  %s962_s21 = smov 0  }
   0x6 LB: > { %s183_s24 = sshll.u32 %s1125_s4, 4  ;;  %s980_s25 = sadd.s32 4294967295, %s911_s21   ;;  %s911_s21 = sphi %s962_s21, %s1136_s21   ;;  %s907_s20 = sphi %s960_s20, %s1135_s20   ;;  %s903_s19 = sphi %s958_s19, %s1134_s19   ;;  %s899_s18 = sphi %s956_s18, %s1133_s18   ;;  %s184_s24 = int_to_ptr.hbm [resolvable:$true] %s183_s24 }
   0x7   : > { %p672_p0 = scmp.ge.s32.totalorder %s911_s21, 1  ;;  %p43_p1 = scmp.eq.s32.totalorder %s980_s25, 0 }
   0x8   : > { %p163_p2 = scmp.lt.s32.totalorder %s911_s21, 3  ;;  %s913_s27 = smov [#allocation6]  }
   0x9   : > { %s185_s28 = sshll.u32 %s913_s27, 4  ;;  %s914_s29 = smov 32   ;;  %s186_s28 = int_to_ptr.vmem [resolvable:$true] %s185_s28 }
   0xa   : > { %p985_p3 = pnand %p672_p0, %p163_p2  ;;  %s915_s30 = smov 2  }
   0xb   : > { %s671_s6 = sadd.s32 4294967294, %s911_s21   ;;  %s996_s7 = sadd.s32 1, %s911_s21  }
   0xc   : > { %p719_p4 = pneg %p985_p3  ;;  %s29_s8 = sadd.s32 1, %s907_s20 }
   0xd   : > { %s26_s9 = ssub.s32 %s911_s21, %s996_s7  ;;  %p36_p7 = scmp.ne.s32.totalorder %s907_s20, %s903_s19 }
   0xe   : > { %p720_p6 = pnand %p719_p4, %p43_p1  ;;  %p27_p8 = scmp.eq.s32.totalorder %s26_s9, 0 }
   0xf   : > { %p37_p9 = scmp.eq.s32.totalorder %s911_s21, 0  ;;  %p42_p10 = scmp.ne.s32.totalorder %s903_s19, %s899_s18 }
  0x10   : > { %722 = dma.hbm_to_vmem [thread:$0]  (!%p720_p6), %s184_s24, 288, %s186_s28, [#allocation7], %s914_s29, %s914_s29, %s915_s30  }
  0x11   : > { %p150_p11 = scmp.eq.s32.totalorder %s980_s25, 1  ;;  %p1012_p12 = por %p43_p1, %p42_p10 }
  0x12   : > { %s1008_s10 = scalar_select %p27_p8, %s907_s20, %s29_s8  }
  0x13   : > { %p1016_p13 = por %p150_p11, %p36_p7  ;;  %p156_p0 = scmp.eq.s32.totalorder %s671_s6, 1 }
  0x14   : > { %p38_p2 = por %p37_p9, %p36_p7  ;;  %s199_s13 = sand.u32 1, %s907_s20  }
  0x15   : > { %p1021_p4 = por %p156_p0, %p42_p10  ;;  %p732_p6 = scmp.lt.s32.totalorder %s911_s21, 2 }
  0x16   : > { %s675_s15 = sshll.u32 %s199_s13, 3  ;;  %s705_s16 = sshll.u32 %s911_s21, 3 }
  0x17   : > { %s208_s23 = scalar_lea.hbm %s1121_s0, %s705_s16  ;;  %s203_s27 = scalar_lea.vmem [#allocation3], %s675_s15 }
  0x18   : > { %s210_s24 = sshll.u32 %s208_s23, 4  ;;  %s212_s28 = sshll.u32 %s203_s27, 4  ;;  %s211_s24 = int_to_ptr.hbm [resolvable:$true] %s210_s24  ;;  %s213_s28 = int_to_ptr.vmem [resolvable:$true] %s212_s28 }
  0x19   : > { %p1030_p8 = pnand %p732_p6, %p38_p2  ;;  %s200_s30 = scalar_lea.sflag [#allocation4], %s199_s13 }
  0x1a   : > { %s811_s6 = sshra.s32 %s211_s24, 4  ;;  %s818_s15 = scalar_lea.hbm %s1121_s0, 16  ;;  %s812_s6 = int_to_ptr.hbm [resolvable:$true] %s811_s6 }
  0x1b   : > { %s813_s8 = scalar_lea.hbm %s812_s6, 8  ;;  %p815_p9 = pneg %p1030_p8 }
  0x1c   : > { %p814_p7 = scmp.ne.s32.totalorder %s812_s6, %s813_s8  ;;  %p819_p0 = scmp.lt.s32.totalorder %s812_s6, %s1121_s0 }
  0x1d   : > { %p820_p2 = scmp.lt.s32.totalorder %s818_s15, %s813_s8 }
  0x1e   : > { %p816_p10 = pnand %p815_p9, %p814_p7 }
  0x1f   : > { %p821_p6 = por %p820_p2, %p819_p0 }
  0x20   : > { %p817_p11 = pneg %p816_p10 }
  0x22   : > { %p822_p5 = pnand %p821_p6, %p817_p11 }
  0x24   : > { %825 = shalt.err (!%p822_p5)
}
  0x25   : > { %726 = dma.hbm_to_vmem [thread:$0]  (!%p1030_p8), %s211_s24, 128, %s213_s28, %s200_s30  }
  0x26   : > { %221 = sbr.rel (%p985_p3) target bundleno = 540 (0x21c), region = 40  ;;  %s1047_s13 = sand.u32 (!%p985_p3), 1, %s903_s19  }
  0x27   : > { %s679_s23 = sshll.u32 (!%p985_p3), %s1047_s13, 3  ;;  %s224_s27 = scalar_lea.sflag (!%p985_p3), [#allocation4], %s1047_s13 }
  0x28   : > { %s227_s9 = scalar_lea.vmem (!%p985_p3), [#allocation3], %s679_s23 }
  0x2b   : > { %886 = dma.done.wait (%p1012_p12), %s224_s27, 128  }
  0x2c   : > { %888 = vsyncadd (%p1012_p12), %s224_s27, 4294967168 }
  0x2d   : > { %890 = dma.done.wait (%p43_p1), [#allocation7], 288  }
  0x2e   : > { %892 = vsyncadd (%p43_p1), [#allocation7], 4294967008  ;;  %v916_v0 = vmov 0   ;;  %v261_v1 = vld [vmem:[%s1122_s1] sm:$0xf]  ;;  %v318_v2 = vld [vmem:[%s227_s9] sm:$0xff]  ;;  %v358_v35 = vlaneseq }
  0x2f   : > { %780 = vset.pattern.permute.xlu0 %v916_v0  ;;  %320 = vst [vmem:[#allocation1] ss:$2 sm:$0xff] %v318_v2  ;;  %v262_v3 = vld [vmem:[%s1123_s2] sm:$0xf]  ;;  %v917_v4 = vmov 839922192  }
  0x30   : > { %329 = vperm.xlu0 %780, %v261_v1   ;;  %v332_v5 = vunpack.c.l.s4 %v917_v4  ;;  %s918_s11 = smov 16   ;;  %s919_s30 = smov 1   ;;  %v1072_v36 = vand.u32 127, %v358_v35  ;;  %v270_v37 = vld [vmem:[#allocation6 + $0x2] sm:$0x3]  ;;  %vm533_vm8 = vcmask 1041408  }
  0x31   : > { %s920_s6 = smov 127   ;;  %s921_s8 = smov 113   ;;  %v272_v38 = vperm.slane %v270_v37, 0  ;;  %v273_v39 = vperm.slane %v270_v37, 1  ;;  %v291_v49 = vld [vmem:[#allocation6 + $0xa] sm:$0x3] }
  0x32   : > { %v333_v7 = vunpack.c.0.s8 %v332_v5  ;;  %s922_s16 = smov 112   ;;  %s923_s15 = smov 17   ;;  %vm376_vm0 = vcmp.lt.s32.totalorder %v1072_v36, 16  ;;  %v293_v50 = vperm.slane %v291_v49, 0  ;;  %v294_v51 = vperm.slane %v291_v49, 1 }
  0x33   : > { %s924_s17 = smov 111   ;;  %s925_s22 = smov 15   ;;  %vm437_vm1 = vcmp.lt.s32.totalorder %v1072_v36, 127  ;;  %v298_v60 = vld [vmem:[#allocation6 + $0xc] sm:$0x3]  ;;  %vm456_vm2 = vcmp.lt.s32.totalorder %v1072_v36, 113 }
  0x34   : > { %s681_s23 = sshll.u32 %s1047_s13, 4  ;;  %v300_v61 = vperm.slane %v298_v60, 0  ;;  %v301_v62 = vperm.slane %v298_v60, 1  ;;  %vm472_vm3 = vcmp.lt.s32.totalorder %v1072_v36, 112  ;;  %vm360_vm4 = vcmp.lt.s32.totalorder %v1072_v36, 17  ;;  %s710_s24 = sshll.u32 %s980_s25, 4 }
  0x35   : > { %s1068_s27 = scalar_lea.vmem [#allocation8], %s681_s23  ;;  %vm491_vm5 = vcmp.lt.s32.totalorder %v1072_v36, 111  ;;  %v284_v37 = vld [vmem:[#allocation6 + $0x6] sm:$0x3]  ;;  %vm411_vm6 = vcmp.lt.s32.totalorder %v1072_v36, 1  ;;  %vm395_vm7 = vcmp.lt.s32.totalorder %v1072_v36, 15 }
  0x36   : > { %v321_v13 = vld.sshfl [vmem:[#allocation1] sm:$0xff pattern:$0x75316420]  ;;  %v322_v14 = vld.sshfl [vmem:[#allocation1 + $0x8] sm:$0xff pattern:$0x75316420] }
  0x37   : > { %325 = vst [vmem:[%s1068_s27] sm:$0xf] %v321_v13  ;;  %vm529_vm9 = vcmask 293888  }
  0x38   : > { %339 = vperm.xlu0 %780, %v262_v3   ;;  %326 = vst [vmem:[%s1068_s27 + $0x8] sm:$0xf] %v322_v14 }
  0xa2   : > { %v330_v6 = vpop.permute.xlu0 %329 }
  0xa3   : > { %v334_v8 = vperm.slane %v330_v6, %v333_v7  ;;  %v305_v6 = vld [vmem:[#allocation6 + $0xe] sm:$0x3] }
  0xa5   : > { %v336_v10 = vmul.f32 %v334_v8, %v318_v2  ;;  %v308_v8 = vperm.slane %v305_v6, 1 }
  0xaa   : > { %v340_v9 = vpop.permute.xlu0 %339 }
  0xab   : > { %v344_v11 = vperm.slane %v340_v9, %v333_v7  ;;  %v307_v7 = vperm.slane %v305_v6, 0 }
  0xad   : > { %v346_v12 = vadd.f32 %v344_v11, %v336_v10 }
  0xaf   : > { %v347_v15 = vmax.f32 %v346_v12, 0.0 }
  0xb1   : > { %349 = vst [vmem:[#allocation1] ss:$2 sm:$0xff] %v347_v15 }
  0xb8   : > { %v350_v16 = vld.sshfl [vmem:[#allocation1] sm:$0xff pattern:$0x75316420]  ;;  %v351_v17 = vld.sshfl [vmem:[#allocation1 + $0x8] sm:$0xff pattern:$0x75316420] }
  0xb9   : > { %367 = vst [vmem:[#allocation1] ss:$2 sm:$0xff] %v347_v15 }
  0xc0   : > { %v369_v18 = vld.sshfl [vmem:[#allocation1 + $0x8] sm:$0xff pattern:$0x75316420]  ;;  %v368_v19 = vld.sshfl [vmem:[#allocation1] sm:$0xff pattern:$0x75316420] }
  0xc1   : > { %374 = vrot.lane.b32.xlu2 %v369_v18, %s918_s11  ;;  %372 = vrot.lane.b32.xlu1 %v368_v19, %s918_s11  ;;  %386 = vst [vmem:[#allocation1] ss:$2 sm:$0xff] %v347_v15  ;;  %s586_s11 = scalar_lea.hbm %s1126_s5, %s710_s24 }
  0xc8   : > { %v387_v20 = vld.sshfl [vmem:[#allocation1] sm:$0xff pattern:$0x75316420]  ;;  %v388_v21 = vld.sshfl [vmem:[#allocation1 + $0x8] sm:$0xff pattern:$0x75316420] }
  0xc9   : > { %402 = vst [vmem:[#allocation1] ss:$2 sm:$0xff] %v347_v15 }
  0xd0   : > { %v403_v22 = vld.sshfl [vmem:[#allocation1] sm:$0xff pattern:$0x75316420]  ;;  %v404_v23 = vld.sshfl [vmem:[#allocation1 + $0x8] sm:$0xff pattern:$0x75316420] }
  0xd1   : > { %407 = vrot.lane.b32.xlu0 %v403_v22, %s919_s30  ;;  %421 = vst [vmem:[#allocation1] ss:$2 sm:$0xff] %v347_v15 }
  0xd8   : > { %v422_v24 = vld.sshfl [vmem:[#allocation1] sm:$0xff pattern:$0x75316420]  ;;  %v423_v25 = vld.sshfl [vmem:[#allocation1 + $0x8] sm:$0xff pattern:$0x75316420] }
  0xd9   : > { %428 = vst [vmem:[#allocation1] ss:$2 sm:$0xff] %v347_v15  ;;  %v426_v26 = vpack.c.bf16 %v423_v25, %v422_v24 }
  0xdb   : > { %427 = vst [vmem:[#allocation2 + $0x10] sm:$0x33] %v426_v26 }
  0xe0   : > { %v429_v27 = vld.sshfl [vmem:[#allocation1] sm:$0xff pattern:$0x75316420]  ;;  %v430_v28 = vld.sshfl [vmem:[#allocation1 + $0x8] sm:$0xff pattern:$0x75316420] }
  0xe1   : > { %433 = vrot.lane.b32.xlu2 %v429_v27, %s920_s6  ;;  %447 = vst [vmem:[#allocation1] ss:$2 sm:$0xff] %v347_v15  ;;  %v312_v27 = vld [vmem:[#allocation6 + $0x10] sm:$0x3] }
  0xe8   : > { %v449_v29 = vld.sshfl [vmem:[#allocation1 + $0x8] sm:$0xff pattern:$0x75316420]  ;;  %v448_v30 = vld.sshfl [vmem:[#allocation1] sm:$0xff pattern:$0x75316420] }
  0xe9   : > { %435 = vrot.lane.b32.xlu2 %v430_v28, %s920_s6  ;;  %454 = vrot.lane.b32.xlu0 %v449_v29, %s921_s8  ;;  %463 = vst [vmem:[#allocation1] ss:$2 sm:$0xff] %v347_v15  ;;  %v314_v29 = vperm.slane %v312_v27, 0  ;;  %s590_s6 = sshll.u32 %s586_s11, 4  ;;  %s591_s6 = int_to_ptr.hbm [resolvable:$true] %s590_s6 }
  0xf0   : > { %v465_v31 = vld.sshfl [vmem:[#allocation1 + $0x8] sm:$0xff pattern:$0x75316420]  ;;  %v464_v32 = vld.sshfl [vmem:[#allocation1] sm:$0xff pattern:$0x75316420] }
  0xf1   : > { %452 = vrot.lane.b32.xlu2 %v448_v30, %s921_s8  ;;  %470 = vrot.lane.b32.xlu1 %v465_v31, %s922_s16  ;;  %482 = vst [vmem:[#allocation1] ss:$2 sm:$0xff] %v347_v15  ;;  %v263_v15 = vld [vmem:[#allocation6] sm:$0x3]  ;;  %v315_v30 = vperm.slane %v312_v27, 1  ;;  %s575_s8 = scalar_lea.sflag [#allocation5], %s1047_s13 }
  0xf2   : > { %468 = vrot.lane.b32.xlu0 %v464_v32, %s922_s16  ;;  %v265_v18 = vperm.slane %v263_v15, 0  ;;  %v266_v19 = vperm.slane %v263_v15, 1  ;;  %s855_s16 = sshra.s32 %s591_s6, 4  ;;  %s856_s16 = int_to_ptr.hbm [resolvable:$true] %s855_s16 }
  0xf3   : > { %p862_p12 = scmp.lt.s32.totalorder %s856_s16, %s1126_s5 }
  0xf8   : > { %v483_v33 = vld.sshfl [vmem:[#allocation1] sm:$0xff pattern:$0x75316420]  ;;  %v484_v34 = vld.sshfl [vmem:[#allocation1 + $0x8] sm:$0xff pattern:$0x75316420] }
  0xf9   : > { %354 = vrot.lane.b32.xlu2 %v350_v16, %s923_s15  ;;  %487 = vrot.lane.b32.xlu1 %v483_v33, %s924_s17 }
  0xfa   : > { %356 = vrot.lane.b32.xlu0 %v351_v17, %s923_s15  ;;  %s857_s15 = scalar_lea.hbm %s856_s16, 16 }
  0xfb   : > { %p858_p1 = scmp.ne.s32.totalorder %s856_s16, %s857_s15 }
  0xfd   : > { %p859_p3 = pnand %p858_p1, %p1016_p13 }
  0xff   : > { %p860_p5 = pneg %p859_p3 }
 0x101   : > { %393 = vrot.lane.b32.xlu2 %v388_v21, %s925_s22  ;;  %489 = vrot.lane.b32.xlu1 %v484_v34, %s924_s17 }
 0x109   : > { %409 = vrot.lane.b32.xlu1 %v404_v23, %s919_s30  ;;  %s588_s30 = sshll.u32 %s1068_s27, 4  ;;  %s589_s30 = int_to_ptr.vmem [resolvable:$true] %s588_s30 }
 0x111   : > { %391 = vrot.lane.b32.xlu1 %v387_v20, %s925_s22  ;;  %s861_s22 = scalar_lea.hbm %s1126_s5, 32 }
 0x112   : > { %p863_p8 = scmp.lt.s32.totalorder %s861_s22, %s857_s15 }
 0x114   : > { %p864_p7 = por %p863_p8, %p862_p12 }
 0x116   : > { %p865_p9 = pnand %p864_p7, %p860_p5 }
 0x11b   : > { %v375_v40 = vpop.permute.xlu2 %374 }
 0x133   : > { %v373_v41 = vpop.permute.xlu1 %372 }
 0x134   : > { %v377_v42 = vsel %vm376_vm0, %v373_v41, %v375_v40  ;;  %v378_v43 = vsel %vm376_vm0, %v375_v40, %v373_v41  ;;  %v287_v40 = vperm.slane %v284_v37, 1 }
 0x135   : > { %v379_v44 = vmul.f32 %v378_v43, %v272_v38  ;;  %v380_v45 = vmul.f32 %v377_v42, %v273_v39  ;;  %v286_v39 = vperm.slane %v284_v37, 0 }
 0x137   : > { %v381_v46 = vpack.c.bf16 %v380_v45, %v379_v44 }
 0x139   : > { %v383_v47 = vrot.slane %v381_v46, 6  ;;  %v277_v46 = vld [vmem:[#allocation6 + $0x4] sm:$0x3] }
 0x13b   : > { %385 = vst [vmem:[#allocation2] sm:$0xcc] %v383_v47  ;;  %v434_v48 = vpop.permute.xlu2 %433 }
 0x143   : > { %v436_v52 = vpop.permute.xlu2 %435  ;;  %v408_v59 = vpop.permute.xlu0 %407 }
 0x144   : > { %v438_v53 = vsel %vm437_vm1, %v434_v48, %v436_v52  ;;  %v439_v54 = vsel %vm437_vm1, %v436_v52, %v434_v48  ;;  %v279_v48 = vperm.slane %v277_v46, 0 }
 0x145   : > { %v440_v55 = vmul.f32 %v438_v53, %v293_v50  ;;  %v441_v56 = vmul.f32 %v439_v54, %v294_v51  ;;  %v280_v51 = vperm.slane %v277_v46, 1 }
 0x147   : > { %v442_v57 = vpack.c.bf16 %v441_v56, %v440_v55 }
 0x149   : > { %v444_v58 = vrot.slane %v442_v57, 6 }
 0x14b   : > { %446 = vst [vmem:[#allocation2 + $0x10] sm:$0xcc] %v444_v58  ;;  %v453_v63 = vpop.permute.xlu2 %452 }
 0x153   : > { %v355_v21 = vpop.permute.xlu2 %354 }
 0x15b   : > { %v455_v0 = vpop.permute.xlu0 %454  ;;  %v394_v54 = vpop.permute.xlu2 %393 }
 0x15c   : > { %v457_v1 = vsel %vm456_vm2, %v453_v63, %v455_v0  ;;  %v458_v2 = vsel %vm456_vm2, %v455_v0, %v453_v63 }
 0x15d   : > { %v459_v3 = vmul.f32 %v457_v1, %v300_v61  ;;  %v460_v4 = vmul.f32 %v458_v2, %v301_v62  ;;  %v692_v2 = vld [vmem:[#allocation2 + $0x10] sm:$0xf] }
 0x15f   : > { %v461_v5 = vpack.c.bf16 %v460_v4, %v459_v3  ;;  %v708_v3 = vld [vmem:[#allocation2 + $0x14] sm:$0xf] }
 0x161   : > { %462 = vst [vmem:[#allocation2 + $0x18] sm:$0x33] %v461_v5 }
 0x163   : > { %v471_v9 = vpop.permute.xlu1 %470 }
 0x164   : > { %v469_v10 = vpop.permute.xlu0 %468 }
 0x165   : > { %v473_v11 = vsel %vm472_vm3, %v469_v10, %v471_v9  ;;  %v474_v12 = vsel %vm472_vm3, %v471_v9, %v469_v10 }
 0x166   : > { %v475_v13 = vmul.f32 %v473_v11, %v307_v7  ;;  %v476_v14 = vmul.f32 %v474_v12, %v308_v8  ;;  %v498_v12 = vld [vmem:[%s1124_s3] sm:$0x3] }
 0x168   : > { %v477_v16 = vpack.c.bf16 %v476_v14, %v475_v13 }
 0x16a   : > { %v479_v17 = vrot.slane %v477_v16, 6 }
 0x16b   : > { %v488_v20 = vpop.permute.xlu1 %487 }
 0x16c   : > { %481 = vst [vmem:[#allocation2 + $0x18] sm:$0xcc] %v479_v17  ;;  %v357_v22 = vpop.permute.xlu0 %356 }
 0x16d   : > { %v361_v23 = vsel %vm360_vm4, %v355_v21, %v357_v22  ;;  %v362_v24 = vsel %vm360_vm4, %v357_v22, %v355_v21 }
 0x16e   : > { %v363_v25 = vmul.f32 %v362_v24, %v265_v18  ;;  %v364_v26 = vmul.f32 %v361_v23, %v266_v19 }
 0x170   : > { %v365_v28 = vpack.c.bf16 %v364_v26, %v363_v25 }
 0x172   : > { %366 = vst [vmem:[#allocation2] sm:$0x33] %v365_v28 }
 0x173   : > { %v490_v31 = vpop.permute.xlu1 %489  ;;  %v709_v0 = vld [vmem:[#allocation2 + $0x14] sm:$0xf0]  ;;  %v694_v1 = vld [vmem:[#allocation2 + $0x18] sm:$0xf0] }
 0x174   : > { %v492_v32 = vsel %vm491_vm5, %v488_v20, %v490_v31  ;;  %v493_v33 = vsel %vm491_vm5, %v490_v31, %v488_v20  ;;  %v693_v4 = vor.u32 %v709_v0, %v692_v2  ;;  %v697_v5 = vor.u32 %v708_v3, %v694_v1 }
 0x175   : > { %v494_v34 = vmul.f32 %v492_v32, %v314_v29  ;;  %v495_v35 = vmul.f32 %v493_v33, %v315_v30 }
 0x177   : > { %v496_v38 = vpack.c.bf16 %v495_v35, %v494_v34 }
 0x179   : > { %497 = vst [vmem:[#allocation2 + $0x20] sm:$0x33] %v496_v38  ;;  %v684_v6 = vld [vmem:[#allocation2] sm:$0xf]  ;;  %v706_v8 = vld [vmem:[#allocation2 + $0x4] sm:$0xf] }
 0x17b   : > { %v410_v41 = vpop.permute.xlu1 %409 }
 0x17c   : > { %v412_v42 = vsel %vm411_vm6, %v408_v59, %v410_v41  ;;  %v413_v43 = vsel %vm411_vm6, %v410_v41, %v408_v59 }
 0x17d   : > { %v414_v44 = vmul.f32 %v413_v43, %v286_v39  ;;  %v415_v45 = vmul.f32 %v412_v42, %v287_v40 }
 0x17f   : > { %v416_v47 = vpack.c.bf16 %v415_v45, %v414_v44 }
 0x180   : > { %v503_v49 = vld [vmem:[#allocation2 + $0x20] sm:$0x33] }
 0x181   : > { %v418_v50 = vrot.slane %v416_v47, 6  ;;  %v517_v52 = vunpack.c.l.b16 %v503_v49  ;;  %v518_v53 = vunpack.c.h.b16 %v503_v49 }
 0x183   : > { %420 = vst [vmem:[#allocation2 + $0x8] sm:$0xcc] %v418_v50  ;;  %v392_v55 = vpop.permute.xlu1 %391  ;;  %v523_v56 = vpack.c.b16 %v517_v52, %v517_v52  ;;  %v524_v57 = vpack.c.b16 %v518_v53, %v518_v53 }
 0x184   : > { %v396_v58 = vsel %vm395_vm7, %v392_v55, %v394_v54  ;;  %v397_v59 = vsel %vm395_vm7, %v394_v54, %v392_v55 }
 0x185   : > { %v398_v60 = vmul.f32 %v397_v59, %v279_v48  ;;  %v399_v61 = vmul.f32 %v396_v58, %v280_v51  ;;  %v535_v62 = vsel %vm533_vm8, %v523_v56, 0  ;;  %v538_v63 = vsel %vm533_vm8, %v524_v57, 0 }
 0x186   : > { %545 = vmatpush.bf16.msra.mxu0 %v535_v62  ;;  %558 = vmatpush.bf16.msra.mxu1 %v538_v63 }
 0x187   : > { %v400_v36 = vpack.c.bf16 %v399_v61, %v398_v60 }
 0x189   : > { %401 = vst [vmem:[#allocation2 + $0x8] sm:$0x33] %v400_v36 }
 0x18a   : > { %546 = vmatpush.bf16.msra.mxu0 %v693_v4  ;;  %559 = vmatpush.bf16.msra.mxu1 %v697_v5 }
 0x190   : > { %v707_v7 = vld [vmem:[#allocation2 + $0x4] sm:$0xf0]  ;;  %v686_v9 = vld [vmem:[#allocation2 + $0x8] sm:$0xf0] }
 0x191   : > { %v685_v10 = vor.u32 %v707_v7, %v684_v6  ;;  %v689_v11 = vor.u32 %v706_v8, %v686_v9 }
 0x193   : > { %547 = vmatpush.bf16.msra.mxu0 %v685_v10  ;;  %560 = vmatpush.bf16.msra.mxu1 %v689_v11 }
 0x196   : > { %698 = vmatmul.msk.bf16.vlgmr.msra.gmra.mxu0 %vm529_vm9, %v498_v12  ;;  %699 = vmatmul.msk.bf16.vlgmr.msra.gmra.mxu1 %vm529_vm9, %v498_v12 }
 0x213   : > { %v549_v13 = vpop.f32.mrf.mxu0  ;;  %v562_v14 = vpop.f32.mrf.mxu1 }
 0x214   : > { %v568_v15 = vrot.slane %v549_v13, 4  ;;  %v569_v16 = vrot.slane %v562_v14, 4 }
 0x216   : > { %572 = vst [vmem:[%s1068_s27] sm:$0xf0] %v568_v15 }
 0x217   : > { %573 = vst [vmem:[%s1068_s27 + $0x8] sm:$0xf0] %v569_v16 }
 0x218   : > { %868 = shalt.err (!%p865_p9)
}
 0x219   : > { %717 = dma.vmem_to_hbm [thread:$0]  (%p1016_p13), %s589_s30, 256, %s591_s6, %s575_s8  }
 0x21b   : > { %v551_v17 = vpop.f32.mrf.mxu0  ;;  %v564_v18 = vpop.f32.mrf.mxu1 }
 0x21c PF: > { %s602_s13 = sand.u32 1, %s899_s18   ;;  %p1132_p10 = scmp.ge.s32.totalorder %s911_s21, 2 }
 0x21d   : > { %s603_s27 = scalar_lea.sflag [#allocation5], %s602_s13 }
 0x21e   : > { %p728_p11 = pnand %p1132_p10, %p1021_p4 }
 0x220   : > { %p729_p0 = pneg %p728_p11 }
 0x222   : > { %894 = dma.done.wait (%p729_p0), %s603_s27, 256  }
 0x223   : > { %896 = vsyncadd (%p729_p0), %s603_s27, 4294967040  ;;  %p19_p13 = scmp.ge.s32.totalorder %s996_s7, 4   ;;  %s1133_s18 = smov %s903_s19 }
 0x224   : > { %s1134_s19 = smov %s907_s20  ;;  %s1135_s20 = smov %s1008_s10 }
 0x225   : > { %s1136_s21 = smov %s996_s7  ;;  %21 = sbr.rel (!%p19_p13) target bundleno = 6 (0x6), region = 96 }
 0x22a   :  { %609 = vsyncpa [#allocation4], 1 }
 0x22b   :  { %611 = vsyncpa [#allocation4 + $0x1], 1 }
 0x22c   :  { %612 = vsyncpa [#allocation7], 1 }
 0x22d   :  { %613 = vsyncpa [#allocation5], 1 }
 0x22e   :  { %615 = vsyncpa [#allocation5 + $0x1], 1 }

</bundles_post_ra>
